<compile_context>
chip_gen: v6e
topology: v6e:2x2x1
jax: 0.10.0
libtpu: 0.0.40
codegen_flags: <defaults>
</compile_context>

<pallas_src>
import functools

import jax
import jax.numpy as jnp
from jax.experimental import pallas as pl
from jax.experimental.pallas import tpu as pltpu

_MIB = 1024 * 1024


def _round_up(x, m):
    return ((x + m - 1) // m) * m


def _cdiv(a, b):
    return (a + b - 1) // b


def _sublane_align(dtype):
    return {4: 8, 2: 16, 1: 32}.get(jnp.dtype(dtype).itemsize, 8)


def _apply_act(x, act):
    if act in (None, "none", "linear"):
        return x
    if act == "relu":
        return jnp.maximum(x, 0.0)
    if act == "tanh":
        return jnp.tanh(x)
    if act == "sigmoid":
        return jax.nn.sigmoid(x)
    raise ValueError(f"unsupported act: {act}")


def _chip_config():
    """(vmem_capacity_bytes, mxu_contraction_depth, num_tensorcores) for device 0."""
    kind = ""
    try:
        kind = jax.devices()[0].device_kind.lower()
    except Exception:
        pass
    vmem_bytes = None
    try:
        info = pltpu.get_tpu_info()
        v = int(getattr(info, "vmem_capacity_bytes", 0) or 0)
        vmem_bytes = v if v > 0 else None
    except Exception:
        vmem_bytes = None
    is_v7 = ("v7" in kind) or ("7x" in kind)
    if vmem_bytes is None:
        vmem_bytes = 64 * _MIB if is_v7 else 128 * _MIB
    old_gen = any(f"v{g}" in kind for g in (2, 3, 4, 5))
    mxu_k = 128 if old_gen else 256   # MXU contraction depth (v2-v5: 128, v6e/v7x: 256)
    num_cores = 2 if is_v7 else 1     # TensorCores per chip
    return vmem_bytes, mxu_k, num_cores


# ----------------------------------------------------------------------------- kernels

def _fused_kernel(a_ref, b_ref, w_ref, bias_ref, o_ref, z_ref, *, act, d1p):
    # a_ref: (tb, d1p), b_ref: (tb, d2p)   (lane padded in the wrapper -> dense stores)
    # w_ref: (d1p + d2p, tn), bias_ref: (1, tn), o_ref: (tb, tn)
    # z_ref: (2, tb, d1p + d2p) double-buffered pack scratch (slot alternates with the
    # row grid step so the pack of step i+1 has no WAR hazard on the matmul of step i).
    slot = pl.program_id(1) % 2
    z = z_ref.at[slot]
    z[:, :d1p] = a_ref[...]
    z[:, d1p:] = b_ref[...]
    acc = jnp.dot(z[...], w_ref[...], preferred_element_type=jnp.float32)
    acc = acc + bias_ref[...].astype(jnp.float32)
    o_ref[...] = _apply_act(acc, act).astype(o_ref.dtype)


def _split_kernel(a_ref, b_ref, w1_ref, w2_ref, bias_ref, o_ref, *, act):
    # cat([a, b], -1) @ W == a @ W[:d1] + b @ W[d1:]
    acc = jnp.dot(a_ref[...], w1_ref[...], preferred_element_type=jnp.float32)
    acc = acc + jnp.dot(b_ref[...], w2_ref[...], preferred_element_type=jnp.float32)
    acc = acc + bias_ref[...].astype(jnp.float32)
    o_ref[...] = _apply_act(acc, act).astype(o_ref.dtype)


def _split_k_kernel(a_ref, b_ref, w1_ref, w2_ref, bias_ref, o_ref, acc_ref, *, act):
    # Split form with a K-reduction grid axis (innermost, "arbitrary").
    k = pl.program_id(2)

    @pl.when(k == 0)
    def _():
        acc_ref[...] = jnp.zeros_like(acc_ref)

    acc_ref[...] += jnp.dot(a_ref[...], w1_ref[...], preferred_element_type=jnp.float32)
    acc_ref[...] += jnp.dot(b_ref[...], w2_ref[...], preferred_element_type=jnp.float32)

    @pl.when(k == pl.num_programs(2) - 1)
    def _():
        acc = acc_ref[...] + bias_ref[...].astype(jnp.float32)
        o_ref[...] = _apply_act(acc, act).astype(o_ref.dtype)


# ------------------------------------------------------------------------------- layer

class CatJointLayerPallas:
    """act(cat([a, b], -1) @ W + bias).  Weight repacking done once at construction."""

    def __init__(self, input_dim1, input_dim2, output_dim, act, weight, bias, *,
                 compute_dtype=None, out_dtype=None,
                 block_rows=None, block_cols=None,
                 vmem_budget_bytes=None, vmem_limit_bytes=None,
                 k_split_threshold=2048):
        if act not in (None, "none", "linear", "relu", "tanh", "sigmoid"):
            raise ValueError(f"unsupported act: {act}")
        d1, d2, out_dim = int(input_dim1), int(input_dim2), int(output_dim)
        assert weight.shape == (d1 + d2, out_dim), "weight rows must equal d1 + d2"
        assert bias.shape[-1] == out_dim

        self.d1, self.d2, self.out_dim, self.act = d1, d2, out_dim, act
        self.block_rows = block_rows

        vmem_cap, mxu_k, num_cores = _chip_config()
        self.num_cores = num_cores
        # Generation-aware VMEM defaults (v7x's per-core VMEM is only 64 MiB).
        small_part = vmem_cap <= 96 * _MIB
        if vmem_budget_bytes is None:
            vmem_budget_bytes = 26 * _MIB if small_part else 64 * _MIB
        if vmem_limit_bytes is None:
            vmem_limit_bytes = 44 * _MIB if small_part else 96 * _MIB
        self.vmem_budget = int(vmem_budget_bytes)
        self.vmem_limit = int(vmem_limit_bytes)

        # Compute dtype for the MXU inputs.  Default keeps the parameter dtype (matches the
        # PyTorch reference numerics); pass compute_dtype=jnp.bfloat16 on v6e/v7x to halve
        # HBM/VMEM traffic and double the MXU rate (accumulation/bias/act stay f32).
        cdt = jnp.dtype(compute_dtype if compute_dtype is not None else weight.dtype)
        self.cdt = cdt
        self.out_dtype = jnp.dtype(out_dtype) if out_dtype is not None else None
        in_bytes = cdt.itemsize

        # Output-feature lane padding: tn always divides out_128, so out_pad never inflates
        # and the output stores are lane dense.
        out_128 = _round_up(out_dim, 128)
        self.out_pad = out_128

        # Mode selection.  Fused only when BOTH operands are shallower than the MXU
        # contraction depth AND the part has a 256-deep MXU (on v2-v5 split is cheaper:
        # the pack copy lands on the single vst slot for zero MXU benefit).
        fused = (mxu_k >= 256) and (d1 < mxu_k) and (d2 < mxu_k)
        if fused:
            self.mode = "fused"
            self.d1p = _round_up(d1, 128)
            self.d2p = _round_up(d2, 128)
            self.kp = self.d1p + self.d2p
            k_tile = self.kp
        elif d1 + d2 > int(k_split_threshold):
            self.mode = "split_k"
            self.nk = max(1, _cdiv(d1 + d2, int(k_split_threshold)))
            self.tk1 = _round_up(_cdiv(d1, self.nk), 128)
            self.tk2 = _round_up(_cdiv(d2, self.nk), 128)
            self.d1_pad = self.nk * self.tk1
            self.d2_pad = self.nk * self.tk2
            k_tile = self.tk1 + self.tk2
        else:
            self.mode = "split"
            k_tile = d1 + d2
        self.k_tile = k_tile

        self.tn = self._pick_tn(out_128, k_tile, in_bytes, block_cols)

        # ---- One-time weight / bias repacking (NOT in the per-call path). ----
        w = jnp.asarray(weight)
        b = jnp.asarray(bias).reshape(-1)
        pad_n = out_128 - out_dim
        self.bias_p = jnp.pad(b.astype(jnp.float32).reshape(1, -1), ((0, 0), (0, pad_n)))
        w1 = w[:d1].astype(cdt)
        w2 = w[d1:].astype(cdt)
        if self.mode == "fused":
            self.w_packed = jnp.concatenate(
                [jnp.pad(w1, ((0, self.d1p - d1), (0, pad_n))),
                 jnp.pad(w2, ((0, self.d2p - d2), (0, pad_n)))], axis=0)
        elif self.mode == "split_k":
            self.w1_p = jnp.pad(w1, ((0, self.d1_pad - d1), (0, pad_n)))
            self.w2_p = jnp.pad(w2, ((0, self.d2_pad - d2), (0, pad_n)))
        else:
            self.w1_p = jnp.pad(w1, ((0, 0), (0, pad_n)))
            self.w2_p = jnp.pad(w2, ((0, 0), (0, pad_n)))

    # ---- tiling heuristics ----------------------------------------------------------

    def _pick_tn(self, out_128, k_tile, in_bytes, block_cols):
        if block_cols is not None:
            tn = min(_round_up(int(block_cols), 128), out_128)
            while out_128 % tn:          # walk down to a divisor of out_128
                tn -= 128
            return tn
        n128 = out_128 // 128
        half_budget = self.vmem_budget // 2
        tn = 128
        for d in range(1, n128 + 1):     # prefer a single N tile when the weight fits
            if n128 % d:
                continue
            cand = d * 128
            w_tile_bytes = 2 * k_tile * cand * in_bytes + 2 * cand * 4
            if w_tile_bytes <= half_budget:
                tn = cand
        return tn

    def _pick_tb(self, n_rows, out_bytes, row_align):
        in_bytes = self.cdt.itemsize
        tn = self.tn
        if self.block_rows is not None:
            tb = _round_up(max(int(self.block_rows), row_align), row_align)
        else:
            # Resident: double-buffered weight tile(s) + bias block.
            resident = 2 * self.k_tile * tn * in_bytes + 2 * tn * 4
            # Per-row: double-buffered activation + output blocks, f32 accumulator
            # intermediate, plus the fused pack scratch / split-K accumulator scratch.
            if self.mode == "fused":
                per_row = 2 * (self.d1p + self.d2p) * in_bytes + 2 * self.kp * in_bytes
            elif self.mode == "split_k":
                per_row = 2 * (self.tk1 + self.tk2) * in_bytes + tn * 4
            else:
                per_row = 2 * (self.d1 + self.d2) * in_bytes
            per_row += 2 * tn * out_bytes + tn * 4
            avail = self.vmem_budget - resident - 2 * _MIB   # Mosaic internal scratch margin
            avail = max(avail, per_row * row_align)
            tb = (avail // per_row) // row_align * row_align
            tb = max(row_align, min(int(tb), 1024))
        tb = min(tb, _round_up(n_rows, row_align))
        # Keep both TensorCores busy on multi-core parts (v7x) when the "parallel" grid
        # would otherwise collapse to a single step.
        if (self.block_rows is None and self.num_cores > 1
                and (self.out_pad // tn) * _cdiv(n_rows, tb) < self.num_cores):
            tb_split = _round_up(_cdiv(n_rows, self.num_cores), row_align)
            if tb_split >= 256:
                tb = tb_split
        return int(tb)

    # ---- forward ----------------------------------------------------------------------

    def __call__(self, tensor_a, tensor_b):
        d1, d2, out_dim = self.d1, self.d2, self.out_dim
        lead = tensor_a.shape[:-1]
        assert tensor_b.shape[:-1] == lead
        assert tensor_a.shape[-1] == d1 and tensor_b.shape[-1] == d2

        out_dtype = self.out_dtype if self.out_dtype is not None else tensor_a.dtype
        cdt = self.cdt
        a2d = tensor_a.reshape(-1, d1).astype(cdt)
        b2d = tensor_b.reshape(-1, d2).astype(cdt)
        n_rows = a2d.shape[0]

        in_bytes = cdt.itemsize
        out_bytes = jnp.dtype(out_dtype).itemsize
        row_align = max(_sublane_align(cdt), _sublane_align(out_dtype))
        tb = self._pick_tb(n_rows, out_bytes, row_align)
        tn, out_pad = self.tn, self.out_pad
        grid_rows = _cdiv(n_rows, tb)
        grid_cols = out_pad // tn

        cost = pl.CostEstimate(
            flops=2 * n_rows * (d1 + d2) * out_dim,
            transcendentals=(n_rows * out_dim if self.act in ("tanh", "sigmoid") else 0),
            bytes_accessed=(n_rows * (d1 + d2) * in_bytes
                            + (d1 + d2) * out_dim * in_bytes
                            + out_dim * 4 + n_rows * out_dim * out_bytes))
        out_shape = jax.ShapeDtypeStruct((n_rows, out_pad), out_dtype)
        cp2 = pltpu.CompilerParams(dimension_semantics=("parallel", "parallel"),
                                   vmem_limit_bytes=self.vmem_limit)

        if self.mode == "fused":
            d1p, d2p, kp = self.d1p, self.d2p, self.kp
            # Lane-pad activations so the in-kernel pack is whole-slab / lane-dense.
            a_in = jnp.pad(a2d, ((0, 0), (0, d1p - d1))) if d1p != d1 else a2d
            b_in = jnp.pad(b2d, ((0, 0), (0, d2p - d2))) if d2p != d2 else b2d
            kernel = functools.partial(_fused_kernel, act=self.act, d1p=d1p)
            out2d = pl.pallas_call(
                kernel,
                out_shape=out_shape,
                grid_spec=pltpu.PrefetchScalarGridSpec(
                    num_scalar_prefetch=0,
                    grid=(grid_cols, grid_rows),          # N outer (weight resident), rows inner
                    in_specs=[pl.BlockSpec((tb, d1p), lambda j, i: (i, 0)),
                              pl.BlockSpec((tb, d2p), lambda j, i: (i, 0)),
                              pl.BlockSpec((kp, tn), lambda j, i: (0, j)),
                              pl.BlockSpec((1, tn), lambda j, i: (0, j))],
                    out_specs=pl.BlockSpec((tb, tn), lambda j, i: (i, j)),
                    scratch_shapes=[pltpu.VMEM((2, tb, kp), cdt)]),
                compiler_params=cp2,
                cost_estimate=cost,
            )(a_in, b_in, self.w_packed, self.bias_p)

        elif self.mode == "split":
            kernel = functools.partial(_split_kernel, act=self.act)
            out2d = pl.pallas_call(
                kernel,
                out_shape=out_shape,
                grid_spec=pltpu.PrefetchScalarGridSpec(
                    num_scalar_prefetch=0,
                    grid=(grid_cols, grid_rows),
                    in_specs=[pl.BlockSpec((tb, d1), lambda j, i: (i, 0)),
                              pl.BlockSpec((tb, d2), lambda j, i: (i, 0)),
                              pl.BlockSpec((d1, tn), lambda j, i: (0, j)),
                              pl.BlockSpec((d2, tn), lambda j, i: (0, j)),
                              pl.BlockSpec((1, tn), lambda j, i: (0, j))],
                    out_specs=pl.BlockSpec((tb, tn), lambda j, i: (i, j))),
                compiler_params=cp2,
                cost_estimate=cost,
            )(a2d, b2d, self.w1_p, self.w2_p, self.bias_p)

        else:  # split_k: deep d1 + d2, K-reduction grid axis restores large tb/tn
            nk, tk1, tk2 = self.nk, self.tk1, self.tk2
            a_in = jnp.pad(a2d, ((0, 0), (0, self.d1_pad - d1))) if self.d1_pad != d1 else a2d
            b_in = jnp.pad(b2d, ((0, 0), (0, self.d2_pad - d2))) if self.d2_pad != d2 else b2d
            kernel = functools.partial(_split_k_kernel, act=self.act)
            out2d = pl.pallas_call(
                kernel,
                out_shape=out_shape,
                grid_spec=pltpu.PrefetchScalarGridSpec(
                    num_scalar_prefetch=0,
                    grid=(grid_cols, grid_rows, nk),      # K innermost (reduction)
                    in_specs=[pl.BlockSpec((tb, tk1), lambda j, i, k: (i, k)),
                              pl.BlockSpec((tb, tk2), lambda j, i, k: (i, k)),
                              pl.BlockSpec((tk1, tn), lambda j, i, k: (k, j)),
                              pl.BlockSpec((tk2, tn), lambda j, i, k: (k, j)),
                              pl.BlockSpec((1, tn), lambda j, i, k: (0, j))],
                    out_specs=pl.BlockSpec((tb, tn), lambda j, i, k: (i, j)),
                    scratch_shapes=[pltpu.VMEM((tb, tn), jnp.float32)]),
                compiler_params=pltpu.CompilerParams(
                    dimension_semantics=("parallel", "parallel", "arbitrary"),
                    vmem_limit_bytes=self.vmem_limit),
                cost_estimate=cost,
            )(a_in, b_in, self.w1_p, self.w2_p, self.bias_p)

        if out_pad != out_dim:
            out2d = out2d[:, :out_dim]
        return out2d.reshape(*lead, out_dim)


def cat_joint_layer(tensor_a, tensor_b, weight, bias, *, act="relu", **kwargs):
    """One-off functional form (packs the weight per call; prefer the class for reuse)."""
    d1, d2 = tensor_a.shape[-1], tensor_b.shape[-1]
    layer = CatJointLayerPallas(d1, d2, weight.shape[-1], act, weight, bias, **kwargs)
    return layer(tensor_a, tensor_b)


if __name__ == "__main__":
    def ref_fn(a, b, w, bs, act_name):
        z = jnp.concatenate([a, b], axis=-1)
        return _apply_act(z @ w + bs, act_name)

    batch, input_dim1, input_dim2, output_dim, act = 8, 32, 32, 64, "relu"
    key = jax.random.PRNGKey(0)
    k_a, k_b, k_w, k_bias = jax.random.split(key, 4)
    tensor_a = jax.random.normal(k_a, (batch, input_dim1), dtype=jnp.float32)
    tensor_b = jax.random.normal(k_b, (batch, input_dim2), dtype=jnp.float32)
    fan_in = input_dim1 + input_dim2
    limit = 1.0 / (fan_in ** 0.5)
    weight = jax.random.uniform(k_w, (fan_in, output_dim), minval=-limit, maxval=limit,
                                dtype=jnp.float32)
    bias = jax.random.uniform(k_bias, (output_dim,), minval=-limit, maxval=limit,
                              dtype=jnp.float32)

    # 1) Module-equivalent layer: pack weights once, call many times (fused/split path
    #    chosen per generation).
    layer = CatJointLayerPallas(input_dim1, input_dim2, output_dim, act, weight, bias)
    out = jax.block_until_ready(layer(tensor_a, tensor_b))
    ref = ref_fn(tensor_a, tensor_b, weight, bias, act)
    assert out.shape == (batch, output_dim)
    assert jnp.allclose(out, ref, atol=1e-4, rtol=1e-4), "f32 mismatch"

    # 2) Extra leading dims + row count not divisible by the row tile + tanh.
    a3 = jax.random.normal(jax.random.PRNGKey(1), (3, 4, input_dim1), jnp.float32)
    b3 = jax.random.normal(jax.random.PRNGKey(2), (3, 4, input_dim2), jnp.float32)
    layer_tanh = CatJointLayerPallas(input_dim1, input_dim2, output_dim, "tanh",
                                     weight, bias, block_rows=8)
    out3 = jax.block_until_ready(layer_tanh(a3, b3))
    ref3 = ref_fn(a3, b3, weight, bias, "tanh")
    assert out3.shape == (3, 4, output_dim)
    assert jnp.allclose(out3, ref3, atol=1e-4, rtol=1e-4), "partial-block mismatch"

    # 3) bf16 matmul inputs (f32 accumulation / bias / activation), loose tolerance.
    a16 = jax.random.normal(jax.random.PRNGKey(3), (16, input_dim1), jnp.float32)
    b16 = jax.random.normal(jax.random.PRNGKey(4), (16, input_dim2), jnp.float32)
    outbf = jax.block_until_ready(
        cat_joint_layer(a16, b16, weight, bias, act=act, compute_dtype=jnp.bfloat16))
    refbf = ref_fn(a16, b16, weight, bias, act)
    assert outbf.shape == (16, output_dim)
    assert jnp.allclose(outbf, refbf, atol=5e-2, rtol=5e-2), "bf16 mismatch"

    # 4) Deeper operands -> split path, and the same weights through the split-K
    #    (K-reduction grid axis) path, forced via a small threshold.
    ds1, ds2, dso, nb = 256, 320, 192, 64
    kw2, kb2 = jax.random.split(jax.random.PRNGKey(5))
    w_s = jax.random.uniform(kw2, (ds1 + ds2, dso), minval=-0.05, maxval=0.05,
                             dtype=jnp.float32)
    b_s = jax.random.uniform(kb2, (dso,), minval=-0.05, maxval=0.05, dtype=jnp.float32)
    a_s = jax.random.normal(jax.random.PRNGKey(6), (nb, ds1), jnp.float32)
    b_in = jax.random.normal(jax.random.PRNGKey(7), (nb, ds2), jnp.float32)
    ref_s = ref_fn(a_s, b_in, w_s, b_s, "relu")
    layer_split = CatJointLayerPallas(ds1, ds2, dso, "relu", w_s, b_s)
    out_s = jax.block_until_ready(layer_split(a_s, b_in))
    assert jnp.allclose(out_s, ref_s, atol=1e-2, rtol=1e-2), "split mismatch"
    layer_splitk = CatJointLayerPallas(ds1, ds2, dso, "relu", w_s, b_s,
                                       k_split_threshold=256)
    out_k = jax.block_until_ready(layer_splitk(a_s, b_in))
    assert jnp.allclose(out_k, ref_s, atol=1e-2, rtol=1e-2), "split-K mismatch"

    print("KERNEL_OK")
</pallas_src>

<mosaic_0001>
module attributes {stable_mosaic.version = 11 : i64} {
  func.func @_fused_kernel(%arg0: i32, %arg1: i32, %arg2: memref<8x128xf32, #tpu.memory_space<vmem>>, %arg3: memref<8x128xf32, #tpu.memory_space<vmem>>, %arg4: memref<256x128xf32, #tpu.memory_space<vmem>>, %arg5: memref<1x128xf32, #tpu.memory_space<vmem>>, %arg6: memref<8x128xf32, #tpu.memory_space<vmem>>, %arg7: memref<2x8x256xf32, #tpu.memory_space<vmem>>) attributes {dimension_semantics = [#tpu.dimension_semantics<parallel>, #tpu.dimension_semantics<parallel>], iteration_bounds = array<i64: 1, 1>, scalar_prefetch = 0 : i64, scratch_operands = 1 : i64, tpu.core_type = #tpu.core_type<tc>, window_params = [{transform_indices = @transform_0, window_bounds = array<i64: 8, 128>}, {transform_indices = @transform_1, window_bounds = array<i64: 8, 128>}, {transform_indices = @transform_2, window_bounds = array<i64: 256, 128>}, {transform_indices = @transform_3, window_bounds = array<i64: 1, 128>}, {transform_indices = @transform_4, window_bounds = array<i64: 8, 128>}]} {
    %c2_i32 = arith.constant 2 : i32
    %c0_i32 = arith.constant 0 : i32
    %0 = arith.cmpi eq, %c2_i32, %c0_i32 : i32
    %c1_i32 = arith.constant 1 : i32
    %1 = arith.select %0, %c1_i32, %c2_i32 : i32
    %2 = arith.remsi %arg1, %1 : i32
    %c0_i32_0 = arith.constant 0 : i32
    %3 = arith.cmpi ne, %2, %c0_i32_0 : i32
    %c0_i32_1 = arith.constant 0 : i32
    %4 = arith.cmpi slt, %2, %c0_i32_1 : i32
    %c0_i32_2 = arith.constant 0 : i32
    %5 = arith.cmpi slt, %1, %c0_i32_2 : i32
    %6 = arith.xori %4, %5 : i1
    %7 = arith.andi %6, %3 : i1
    %8 = arith.addi %2, %1 : i32
    %9 = arith.select %7, %8, %2 : i32
    %c0 = arith.constant 0 : index
    %c0_3 = arith.constant 0 : index
    %10 = vector.load %arg2[%c0, %c0_3] : memref<8x128xf32, #tpu.memory_space<vmem>>, vector<8x128xf32>
    %c0_i32_4 = arith.constant 0 : i32
    %c0_i32_5 = arith.constant 0 : i32
    %11 = tpu.memref_slice %arg7[%9, %c0_i32_4, %c0_i32_5] : memref<2x8x256xf32, #tpu.memory_space<vmem>> -> memref<1x8x256xf32, #tpu.memory_space<vmem>>
    %12 = tpu.memref_squeeze %11 : memref<1x8x256xf32, #tpu.memory_space<vmem>> -> memref<8x256xf32, #tpu.memory_space<vmem>>
    %c0_6 = arith.constant 0 : index
    %c0_7 = arith.constant 0 : index
    %13 = vector.load %12[%c0_6, %c0_7] : memref<8x256xf32, #tpu.memory_space<vmem>>, vector<8x128xf32>
    tpu.vector_store %12[%c0_6, %c0_7], %10 {strides = array<i32>} : memref<8x256xf32, #tpu.memory_space<vmem>>, vector<8x128xf32>,
    %c0_8 = arith.constant 0 : index
    %c0_9 = arith.constant 0 : index
    %14 = vector.load %arg3[%c0_8, %c0_9] : memref<8x128xf32, #tpu.memory_space<vmem>>, vector<8x128xf32>
    %c0_i32_10 = arith.constant 0 : i32
    %c0_i32_11 = arith.constant 0 : i32
    %15 = tpu.memref_slice %arg7[%9, %c0_i32_10, %c0_i32_11] : memref<2x8x256xf32, #tpu.memory_space<vmem>> -> memref<1x8x256xf32, #tpu.memory_space<vmem>>
    %16 = tpu.memref_squeeze %15 : memref<1x8x256xf32, #tpu.memory_space<vmem>> -> memref<8x256xf32, #tpu.memory_space<vmem>>
    %c0_12 = arith.constant 0 : index
    %c128 = arith.constant 128 : index
    %17 = vector.load %16[%c0_12, %c128] : memref<8x256xf32, #tpu.memory_space<vmem>>, vector<8x128xf32>
    tpu.vector_store %16[%c0_12, %c128], %14 {strides = array<i32>} : memref<8x256xf32, #tpu.memory_space<vmem>>, vector<8x128xf32>,
    %18 = arith.index_cast %9 : i32 to index
    %c0_13 = arith.constant 0 : index
    %c0_14 = arith.constant 0 : index
    %19 = vector.load %arg7[%18, %c0_13, %c0_14] : memref<2x8x256xf32, #tpu.memory_space<vmem>>, vector<1x8x256xf32>
    %20 = vector.shape_cast %19 : vector<1x8x256xf32> to vector<8x256xf32>
    %c0_15 = arith.constant 0 : index
    %c0_16 = arith.constant 0 : index
    %21 = vector.load %arg4[%c0_15, %c0_16] : memref<256x128xf32, #tpu.memory_space<vmem>>, vector<256x128xf32>
    %cst = arith.constant dense<0.000000e+00> : vector<8x128xf32>
    %22 = tpu.matmul %20, %21, %cst {dimension_numbers = #tpu.dot_dimension_numbers<[1], [0], [0], [1], [0, 0, 1, 1], [], []>} : vector<8x256xf32>, vector<256x128xf32>, vector<8x128xf32> -> vector<8x128xf32>
    %c0_17 = arith.constant 0 : index
    %c0_18 = arith.constant 0 : index
    %23 = vector.load %arg5[%c0_17, %c0_18] : memref<1x128xf32, #tpu.memory_space<vmem>>, vector<1x128xf32>
    %24 = vector.broadcast %23 : vector<1x128xf32> to vector<8x128xf32>
    %25 = arith.addf %22, %24 : vector<8x128xf32>
    %cst_19 = arith.constant 0.000000e+00 : f32
    %26 = vector.broadcast %cst_19 : f32 to vector<8x128xf32>
    %27 = arith.maximumf %25, %26 : vector<8x128xf32>
    %c0_20 = arith.constant 0 : index
    %c0_21 = arith.constant 0 : index
    %28 = vector.load %arg6[%c0_20, %c0_21] : memref<8x128xf32, #tpu.memory_space<vmem>>, vector<8x128xf32>
    tpu.vector_store %arg6[%c0_20, %c0_21], %27 {strides = array<i32>} : memref<8x128xf32, #tpu.memory_space<vmem>>, vector<8x128xf32>,
    return
  }
  func.func @transform_0(%arg0: i32, %arg1: i32) -> (i32, i32) {
    %c0_i32 = arith.constant 0 : i32
    %c0_i32_0 = arith.constant 0 : i32
    return %arg1, %c0_i32 : i32, i32
  }
  func.func @transform_1(%arg0: i32, %arg1: i32) -> (i32, i32) {
    %c0_i32 = arith.constant 0 : i32
    %c0_i32_0 = arith.constant 0 : i32
    return %arg1, %c0_i32 : i32, i32
  }
  func.func @transform_2(%arg0: i32, %arg1: i32) -> (i32, i32) {
    %c0_i32 = arith.constant 0 : i32
    %c0_i32_0 = arith.constant 0 : i32
    return %c0_i32, %arg0 : i32, i32
  }
  func.func @transform_3(%arg0: i32, %arg1: i32) -> (i32, i32) {
    %c0_i32 = arith.constant 0 : i32
    %c0_i32_0 = arith.constant 0 : i32
    return %c0_i32, %arg0 : i32, i32
  }
  func.func @transform_4(%arg0: i32, %arg1: i32) -> (i32, i32) {
    %c0_i32 = arith.constant 0 : i32
    return %arg1, %arg0 : i32, i32
  }
}

</mosaic_0001>

<bundles_post_ra>
// kernel: tpu_custom_call.1
= control target key start
LH: loop header
LB: loop body
LE: loop exit
PB: predicated region body
PF: predicated region fallthrough
CT: control target
= control target key end

     0   :  { %9 = vsyncpa [#allocation4], 0  ;;  %s375_s0 = inlined_call_operand.hbm [shape: f32[8,128], index: 0, kind: input, shape index: {}]   ;;  %s376_s1 = inlined_call_operand.hbm [shape: f32[8,128], index: 1, kind: input, shape index: {}]   ;;  %s377_s2 = inlined_call_operand.hbm [shape: f32[256,128], index: 2, kind: input, shape index: {}]   ;;  %s378_s3 = inlined_call_operand.vmem [shape: f32[1,128], index: 3, kind: input, shape index: {}]   ;;  %s379_s4 = inlined_call_operand.hbm [shape: f32[8,128], index: 4, kind: output, shape index: {}]  }
   0x1   :  { %10 = vsyncpa [#allocation7], 0 }
   0x2   :  { %11 = vsyncpa [#allocation5], 0  ;;  %s329_s15 = smov [#allocation6]   ;;  %s330_s17 = smov [#allocation3]  }
   0x3   :  { %s28_s16 = sshll.u32 %s329_s15, 4  ;;  %s18_s18 = sshll.u32 %s330_s17, 4  ;;  %s29_s16 = int_to_ptr.vmem [resolvable:$true] %s28_s16  ;;  %s19_s18 = int_to_ptr.vmem [resolvable:$true] %s18_s18 }
   0x4   :  { %s251_s19 = scalar_lea.vmem %s29_s16, 128  ;;  %p256_p1 = scmp.lt.s32.totalorder %s29_s16, %s29_s16 }
   0x5   :  { %p252_p0 = scmp.ne.s32.totalorder %s29_s16, %s251_s19  ;;  %p257_p2 = scmp.lt.s32.totalorder %s251_s19, %s251_s19 }
   0x7   :  { %p258_p3 = por %p257_p2, %p256_p1 }
   0x9   :  { %p259_p4 = pnand %p258_p3, %p252_p0 }
   0xb   :  { %262 = shalt.err (!%p259_p4)
}
   0xc   :  { %31 = dma.hbm_to_vmem [thread:$0]  %s376_s1, 128, %s29_s16, [#allocation7]  }
   0xd   :  { %s271_s22 = scalar_lea.vmem %s19_s18, 128  ;;  %p276_p6 = scmp.lt.s32.totalorder %s19_s18, %s19_s18 }
   0xe   :  { %p272_p5 = scmp.ne.s32.totalorder %s19_s18, %s271_s22  ;;  %p277_p7 = scmp.lt.s32.totalorder %s271_s22, %s271_s22 }
  0x10   :  { %p278_p8 = por %p277_p7, %p276_p6 }
  0x12   :  { %p279_p9 = pnand %p278_p8, %p272_p5 }
  0x14   :  { %282 = shalt.err (!%p279_p9)
}
  0x15   :  { %21 = dma.hbm_to_vmem [thread:$0]  %s375_s0, 128, %s19_s18, [#allocation4]  }
  0x16   :  { %s331_s25 = smov [#allocation8]  }
  0x17   :  { %s37_s26 = sshll.u32 %s331_s25, 4  ;;  %s38_s26 = int_to_ptr.vmem [resolvable:$true] %s37_s26 }
  0x18   :  { %s291_s27 = scalar_lea.vmem %s38_s26, 4096  ;;  %p296_p11 = scmp.lt.s32.totalorder %s38_s26, %s38_s26 }
  0x19   :  { %p292_p10 = scmp.ne.s32.totalorder %s38_s26, %s291_s27  ;;  %p297_p12 = scmp.lt.s32.totalorder %s291_s27, %s291_s27 }
  0x1b   :  { %p298_p13 = por %p297_p12, %p296_p11 }
  0x1d   :  { %p299_p0 = pnand %p298_p13, %p292_p10 }
  0x1f   :  { %302 = shalt.err (!%p299_p0)
}
  0x20   :  { %s332_s1 = smov 128   ;;  %s333_s28 = smov 8  }
  0x21   :  { %43 = dma.hbm_to_vmem [thread:$0]  %s377_s2, 4096, %s38_s26, [#allocation7], %s332_s1, %s332_s1, %s333_s28  }
  0x22   :  { %323 = dma.done.wait [#allocation4], 128  }
  0x23   :  { %324 = vsyncadd [#allocation4], 4294967168 }
  0x24   :  { %325 = dma.done.wait [#allocation7], 4224  }
  0x25   :  { %326 = vsyncadd [#allocation7], 4294963072  ;;  %v103_v0 = vld [vmem:[#allocation8 + $0xf8] sm:$0xff]  ;;  %v102_v2 = vld [vmem:[#allocation8 + $0xf0] sm:$0xff]  ;;  %s334_s5 = smov [#allocation9]  }
  0x26   :  { %v87_v1 = vld [vmem:[#allocation8 + $0x78] sm:$0xff]  ;;  %202 = vmatprep.subr.mxu0 %v103_v0  ;;  %v86_v3 = vld [vmem:[#allocation8 + $0x70] sm:$0xff]  ;;  %v101_v4 = vld [vmem:[#allocation8 + $0xe8] sm:$0xff]  ;;  %s189_s6 = sshll.u32 %s334_s5, 4  ;;  %s190_s6 = int_to_ptr.vmem [resolvable:$true] %s189_s6 }
  0x27   :  { %203 = vmatpush3.msra.mxu0 %v87_v1  ;;  %v85_v5 = vld [vmem:[#allocation8 + $0x68] sm:$0xff]  ;;  %v100_v6 = vld [vmem:[#allocation8 + $0xe0] sm:$0xff]  ;;  %v99_v8 = vld [vmem:[#allocation8 + $0xd8] sm:$0xff]  ;;  %s303_s7 = scalar_lea.vmem %s190_s6, 128  ;;  %p308_p2 = scmp.lt.s32.totalorder %s190_s6, %s190_s6 }
  0x28   :  { %204 = vmatprep.subr.mxu0 %v102_v2  ;;  %v84_v7 = vld [vmem:[#allocation8 + $0x60] sm:$0xff]  ;;  %v83_v9 = vld [vmem:[#allocation8 + $0x58] sm:$0xff]  ;;  %v98_v10 = vld [vmem:[#allocation8 + $0xd0] sm:$0xff]  ;;  %p304_p1 = scmp.ne.s32.totalorder %s190_s6, %s303_s7  ;;  %p309_p3 = scmp.lt.s32.totalorder %s303_s7, %s303_s7 }
  0x29   :  { %205 = vmatpush3.msra.mxu0 %v86_v3  ;;  %v82_v11 = vld [vmem:[#allocation8 + $0x50] sm:$0xff]  ;;  %v97_v12 = vld [vmem:[#allocation8 + $0xc8] sm:$0xff]  ;;  %v68_v13 = vld [vmem:[#allocation6] sm:$0xff] }
  0x2a   :  { %206 = vmatprep.subr.mxu0 %v101_v4  ;;  %v81_v14 = vld [vmem:[#allocation8 + $0x48] sm:$0xff]  ;;  %175 = vmatprep.mubr.f32.mxu0 %v68_v13  ;;  %v96_v15 = vld [vmem:[#allocation8 + $0xc0] sm:$0xff]  ;;  %v95_v17 = vld [vmem:[#allocation8 + $0xb8] sm:$0xff]  ;;  %p310_p4 = por %p309_p3, %p308_p2 }
  0x2b   :  { %207 = vmatpush3.msra.mxu0 %v85_v5  ;;  %v80_v16 = vld [vmem:[#allocation8 + $0x40] sm:$0xff]  ;;  %v79_v18 = vld [vmem:[#allocation8 + $0x38] sm:$0xff]  ;;  %v94_v19 = vld [vmem:[#allocation8 + $0xb0] sm:$0xff] }
  0x2c   :  { %208 = vmatprep.subr.mxu0 %v100_v6  ;;  %v78_v20 = vld [vmem:[#allocation8 + $0x30] sm:$0xff]  ;;  %v93_v21 = vld [vmem:[#allocation8 + $0xa8] sm:$0xff]  ;;  %v92_v23 = vld [vmem:[#allocation8 + $0xa0] sm:$0xff]  ;;  %p311_p5 = pnand %p310_p4, %p304_p1 }
  0x2d   :  { %209 = vmatpush3.msra.mxu0 %v84_v7  ;;  %v77_v22 = vld [vmem:[#allocation8 + $0x28] sm:$0xff]  ;;  %v76_v24 = vld [vmem:[#allocation8 + $0x20] sm:$0xff]  ;;  %v91_v25 = vld [vmem:[#allocation8 + $0x98] sm:$0xff] }
  0x2e   :  { %210 = vmatprep.subr.mxu0 %v99_v8  ;;  %v75_v26 = vld [vmem:[#allocation8 + $0x18] sm:$0xff]  ;;  %v90_v27 = vld [vmem:[#allocation8 + $0x90] sm:$0xff]  ;;  %v89_v29 = vld [vmem:[#allocation8 + $0x88] sm:$0xff] }
  0x2f   :  { %211 = vmatpush3.msra.mxu0 %v83_v9  ;;  %v74_v28 = vld [vmem:[#allocation8 + $0x10] sm:$0xff]  ;;  %v73_v30 = vld [vmem:[#allocation8 + $0x8] sm:$0xff]  ;;  %v88_v31 = vld [vmem:[#allocation8 + $0x80] sm:$0xff] }
  0x30   :  { %212 = vmatprep.subr.mxu0 %v98_v10  ;;  %v72_v32 = vld [vmem:[#allocation8] sm:$0xff]  ;;  %v63_v33 = vld [vmem:[#allocation3] sm:$0xff] }
  0x31   :  { %213 = vmatpush3.msra.mxu0 %v82_v11  ;;  %v201_v35 = vld [vmem:[%s378_s3] ss:$0 sm:$0xff] }
  0x32   :  { %214 = vmatprep.subr.mxu0 %v97_v12 }
  0x33   :  { %215 = vmatpush3.msra.mxu0 %v81_v14 }
  0x34   :  { %216 = vmatprep.subr.mxu0 %v96_v15 }
  0x35   :  { %217 = vmatpush3.msra.mxu0 %v80_v16 }
  0x36   :  { %218 = vmatprep.subr.mxu0 %v95_v17 }
  0x37   :  { %219 = vmatpush3.msra.mxu0 %v79_v18 }
  0x38   :  { %220 = vmatprep.subr.mxu0 %v94_v19 }
  0x39   :  { %221 = vmatpush3.msra.mxu0 %v78_v20 }
  0x3a   :  { %222 = vmatprep.subr.mxu0 %v93_v21 }
  0x3b   :  { %223 = vmatpush3.msra.mxu0 %v77_v22 }
  0x3c   :  { %224 = vmatprep.subr.mxu0 %v92_v23 }
  0x3d   :  { %225 = vmatpush3.msra.mxu0 %v76_v24 }
  0x3e   :  { %226 = vmatprep.subr.mxu0 %v91_v25 }
  0x3f   :  { %227 = vmatpush3.msra.mxu0 %v75_v26 }
  0x40   :  { %228 = vmatprep.subr.mxu0 %v90_v27 }
  0x41   :  { %229 = vmatpush3.msra.mxu0 %v74_v28 }
  0x42   :  { %230 = vmatprep.subr.mxu0 %v89_v29 }
  0x43   :  { %231 = vmatpush3.msra.mxu0 %v73_v30 }
  0x44   :  { %232 = vmatprep.subr.mxu0 %v88_v31 }
  0x45   :  { %233 = vmatpush3.msra.mxu0 %v72_v32 }
  0x46   :  { %176 = vmatmul.mubr.f32.vlgmr.msra.gmra.mxu0 %v63_v33 }
 0x106   :  { %v234_v34 = vpop.f32.mrf.mxu0 }
 0x108   :  { %v235_v36 = vpop.f32.mrf.mxu0 }
 0x109   :  { %v236_v37 = vadd.f32 %v235_v36, %v234_v34 }
 0x10b   :  { %v178_v38 = vadd.f32 %v236_v37, %v201_v35 }
 0x10d   :  { %v181_v39 = vmax.f32 %v178_v38, 0.0 }
 0x10f   :  { %182 = vst [vmem:[#allocation9] sm:$0xff] %v181_v39 }
 0x110   :  { %314 = shalt.err (!%p311_p5)
}
 0x111   :  { %192 = dma.vmem_to_hbm [thread:$0]  %s190_s6, 128, %s379_s4, [#allocation5]  }
 0x112   :  { %327 = dma.done.wait [#allocation5], 128  }
 0x113   :  { %328 = vsyncadd [#allocation5], 4294967168 }
 0x114   :  { %196 = vsyncpa [#allocation4], 1 }
 0x115   :  { %197 = vsyncpa [#allocation7], 1 }
 0x116   :  { %198 = vsyncpa [#allocation5], 1 }

</bundles_post_ra>
